<compile_context>
chip_gen: v6e
topology: v6e:2x2x1
jax: 0.10.0
libtpu: 0.0.40
codegen_flags: <defaults>
</compile_context>

<pallas_src>
import jax
import jax.numpy as jnp
from jax import lax
from jax.experimental import pallas as pl
from jax.experimental.pallas import tpu as pltpu


def lstm_fc_kernel(x_ref, wih_ref, b_ref, whh_ref, wfc_ref, bfc_ref,
                   out_ref, xb_sc):
    """Single-grid-point kernel: full LSTM over T steps, then FC on last h.

    Refs:
      x_ref   : (T, B, 1)    input sequence (input_size == 1), time-major
      wih_ref : (1, 1, 4H)   packed input weights, gate order i|f|g|o
      b_ref   : (1, 1, 4H)   packed combined bias (b_ih + b_hh)
      whh_ref : (H, 4H)      fused recurrent weights (h @ W -> gates i|f|g|o)
      wfc_ref : (H, Opad)    fc weight, transposed + lane-padded
      bfc_ref : (1, Opad)    fc bias, lane-padded
      out_ref : (B, Opad)    output (lane-padded)
      xb_sc   : (T, B, 4H)   VMEM scratch: hoisted input projection + bias
    """
    T, B, _ = x_ref.shape
    H4 = whh_ref.shape[1]
    H = H4 // 4

    # Hoisted input projection + bias for ALL timesteps (one broadcast mul+add
    # on the VPU; removes all non-recurrent work from the serial loop).
    xb_sc[...] = x_ref[...] * wih_ref[...] + b_ref[...]          # (T, B, 4H)

    whh = whh_ref[...]                                           # (H, 4H)

    def step(t, carry):
        h, c = carry
        # One fused, lane-dense MXU call per step: (B,H)@(H,4H) -> (B,4H)
        gates = xb_sc[t] + jnp.dot(h, whh,
                                   preferred_element_type=jnp.float32)
        i_g = jax.nn.sigmoid(gates[:, 0:H])
        f_g = jax.nn.sigmoid(gates[:, H:2 * H])
        g_g = jnp.tanh(gates[:, 2 * H:3 * H])
        o_g = jax.nn.sigmoid(gates[:, 3 * H:4 * H])
        c_new = f_g * c + i_g * g_g
        h_new = o_g * jnp.tanh(c_new)
        return (h_new, c_new)

    h0 = jnp.zeros((B, H), jnp.float32)
    c0 = jnp.zeros((B, H), jnp.float32)
    hT, _ = lax.fori_loop(0, T, step, (h0, c0), unroll=True)

    # FC on the last hidden state; lane-dense (padded to 128) unmasked store.
    out_ref[...] = (jnp.dot(hT, wfc_ref[...],
                            preferred_element_type=jnp.float32)
                    + bfc_ref[...])


def lstm_model_forward(x, params):
    """x: (B, T) float32.  Returns (B, output_size) float32."""
    B, T = x.shape
    wih, b, whh, wfc, bfc, out_size = params
    H4 = whh.shape[1]
    O_pad = wfc.shape[1]

    # Pad batch to a sublane multiple (8); padded rows are discarded at the end.
    B_pad = ((B + 7) // 8) * 8
    x_pad = jnp.pad(x, ((0, B_pad - B), (0, 0)))
    x_tb1 = x_pad.T[:, :, None]                                  # (T, B_pad, 1)

    out = pl.pallas_call(
        lstm_fc_kernel,
        out_shape=jax.ShapeDtypeStruct((B_pad, O_pad), jnp.float32),
        in_specs=[pl.BlockSpec(memory_space=pltpu.MemorySpace.VMEM)] * 6,
        out_specs=pl.BlockSpec(memory_space=pltpu.MemorySpace.VMEM),
        scratch_shapes=[pltpu.VMEM((T, B_pad, H4), jnp.float32)],
    )(x_tb1, wih, b, whh, wfc, bfc)

    return out[:B, :out_size]


def init_params(key, hidden_size, output_size):
    """Deterministic init matching PyTorch parameter shapes.

    nn.LSTM(input_size=1, hidden_size=H):
      weight_ih_l0 (4H, 1), weight_hh_l0 (4H, H), bias_ih_l0 (4H,), bias_hh_l0 (4H,)
    nn.Linear(H, O): weight (O, H), bias (O,)
    """
    H, O = hidden_size, output_size
    k = jax.random.split(key, 6)
    bound = 1.0 / jnp.sqrt(H)
    w_ih = jax.random.uniform(k[0], (4 * H, 1), jnp.float32, -bound, bound)
    w_hh = jax.random.uniform(k[1], (4 * H, H), jnp.float32, -bound, bound)
    b_ih = jax.random.uniform(k[2], (4 * H,), jnp.float32, -bound, bound)
    b_hh = jax.random.uniform(k[3], (4 * H,), jnp.float32, -bound, bound)
    w_fc = jax.random.uniform(k[4], (O, H), jnp.float32, -bound, bound)
    b_fc = jax.random.uniform(k[5], (O,), jnp.float32, -bound, bound)

    # Fused packing for the kernel (gate order i|f|g|o along the last dim).
    wih = w_ih[:, 0].reshape(1, 1, 4 * H)                    # (1, 1, 4H)
    b = (b_ih + b_hh).reshape(1, 1, 4 * H)                   # (1, 1, 4H)
    whh = w_hh.T                                             # (H, 4H): h@W -> i|f|g|o
    # FC weight/bias, transposed and lane-padded to a multiple of 128.
    O_pad = ((O + 127) // 128) * 128
    wfc = jnp.zeros((H, O_pad), jnp.float32).at[:, :O].set(w_fc.T)
    bfc = jnp.zeros((1, O_pad), jnp.float32).at[:, :O].set(b_fc)

    params = (wih, b, whh, wfc, bfc, O)
    raw = (w_ih, w_hh, b_ih, b_hh, w_fc, b_fc)
    return params, raw


def lstm_model_ref(x, raw):
    """Pure-JAX reference mirroring the PyTorch forward."""
    w_ih, w_hh, b_ih, b_hh, w_fc, b_fc = raw
    B, T = x.shape
    H = w_hh.shape[1]

    def cell(carry, x_t):
        h, c = carry
        gates = (x_t[:, None] * w_ih[:, 0][None, :]
                 + h @ w_hh.T + b_ih + b_hh)
        i = jax.nn.sigmoid(gates[:, 0:H])
        f = jax.nn.sigmoid(gates[:, H:2 * H])
        g = jnp.tanh(gates[:, 2 * H:3 * H])
        o = jax.nn.sigmoid(gates[:, 3 * H:4 * H])
        c = f * c + i * g
        h = o * jnp.tanh(c)
        return (h, c), None

    h0 = jnp.zeros((B, H), jnp.float32)
    c0 = jnp.zeros((B, H), jnp.float32)
    (hT, _), _ = lax.scan(cell, (h0, c0), x.T)
    return hT @ w_fc.T + b_fc


if __name__ == "__main__":
    B, T, H, O = 2, 8, 32, 4  # batch, time_step, hidden_size, output_size

    key = jax.random.PRNGKey(0)
    kx, kp = jax.random.split(key)
    x = jax.random.normal(kx, (B, T), jnp.float32)

    params, raw = init_params(kp, H, O)

    out = lstm_model_forward(x, params)
    out = jax.block_until_ready(out)

    ref = jax.block_until_ready(lstm_model_ref(x, raw))
    assert out.shape == (B, O)
    assert jnp.allclose(out, ref, atol=1e-5, rtol=1e-5), (out, ref)

    print("KERNEL_OK")
</pallas_src>

<mosaic_0001>
module attributes {stable_mosaic.version = 11 : i64} {
  func.func @lstm_fc_kernel(%arg0: memref<8x8x1xf32, #tpu.memory_space<vmem>>, %arg1: memref<1x1x128xf32, #tpu.memory_space<vmem>>, %arg2: memref<1x1x128xf32, #tpu.memory_space<vmem>>, %arg3: memref<32x128xf32, #tpu.memory_space<vmem>>, %arg4: memref<32x128xf32, #tpu.memory_space<vmem>>, %arg5: memref<1x128xf32, #tpu.memory_space<vmem>>, %arg6: memref<8x128xf32, #tpu.memory_space<vmem>>, %arg7: memref<8x8x128xf32, #tpu.memory_space<vmem>>) attributes {dimension_semantics = [], scalar_prefetch = 0 : i64, scratch_operands = 1 : i64, tpu.core_type = #tpu.core_type<tc>} {
    %c0 = arith.constant 0 : index
    %c0_0 = arith.constant 0 : index
    %c0_1 = arith.constant 0 : index
    %0 = vector.load %arg0[%c0, %c0_0, %c0_1] : memref<8x8x1xf32, #tpu.memory_space<vmem>>, vector<8x8x1xf32>
    %c0_2 = arith.constant 0 : index
    %c0_3 = arith.constant 0 : index
    %c0_4 = arith.constant 0 : index
    %1 = vector.load %arg1[%c0_2, %c0_3, %c0_4] : memref<1x1x128xf32, #tpu.memory_space<vmem>>, vector<1x1x128xf32>
    %2 = vector.broadcast %0 : vector<8x8x1xf32> to vector<8x8x128xf32>
    %3 = vector.broadcast %1 : vector<1x1x128xf32> to vector<8x8x128xf32>
    %4 = arith.mulf %2, %3 : vector<8x8x128xf32>
    %c0_5 = arith.constant 0 : index
    %c0_6 = arith.constant 0 : index
    %c0_7 = arith.constant 0 : index
    %5 = vector.load %arg2[%c0_5, %c0_6, %c0_7] : memref<1x1x128xf32, #tpu.memory_space<vmem>>, vector<1x1x128xf32>
    %6 = vector.broadcast %5 : vector<1x1x128xf32> to vector<8x8x128xf32>
    %7 = arith.addf %4, %6 : vector<8x8x128xf32>
    %c0_8 = arith.constant 0 : index
    %c0_9 = arith.constant 0 : index
    %c0_10 = arith.constant 0 : index
    %8 = vector.load %arg7[%c0_8, %c0_9, %c0_10] : memref<8x8x128xf32, #tpu.memory_space<vmem>>, vector<8x8x128xf32>
    tpu.vector_store %arg7[%c0_8, %c0_9, %c0_10], %7 {strides = array<i32>} : memref<8x8x128xf32, #tpu.memory_space<vmem>>, vector<8x8x128xf32>,
    %c0_11 = arith.constant 0 : index
    %c0_12 = arith.constant 0 : index
    %9 = vector.load %arg3[%c0_11, %c0_12] : memref<32x128xf32, #tpu.memory_space<vmem>>, vector<32x128xf32>
    %cst = arith.constant 0.000000e+00 : f32
    %10 = vector.broadcast %cst : f32 to vector<8x32xf32>
    %cst_13 = arith.constant 0.000000e+00 : f32
    %11 = vector.broadcast %cst_13 : f32 to vector<8x32xf32>
    %c0_i32 = arith.constant 0 : i32
    %12 = arith.index_cast %c0_i32 : i32 to index
    %c0_14 = arith.constant 0 : index
    %c0_15 = arith.constant 0 : index
    %13 = vector.load %arg7[%12, %c0_14, %c0_15] : memref<8x8x128xf32, #tpu.memory_space<vmem>>, vector<1x8x128xf32>
    %14 = vector.shape_cast %13 : vector<1x8x128xf32> to vector<8x128xf32>
    %cst_16 = arith.constant dense<0.000000e+00> : vector<8x128xf32>
    %15 = tpu.matmul %10, %9, %cst_16 {dimension_numbers = #tpu.dot_dimension_numbers<[1], [0], [0], [1], [0, 0, 1, 1], [], []>} : vector<8x32xf32>, vector<32x128xf32>, vector<8x128xf32> -> vector<8x128xf32>
    %16 = arith.addf %14, %15 : vector<8x128xf32>
    %17 = vector.extract_strided_slice %16 {offsets = [0, 0], sizes = [8, 32], strides = [1, 1]} : vector<8x128xf32> to vector<8x32xf32>
    %18 = arith.negf %17 : vector<8x32xf32>
    %19 = math.exp %18 : vector<8x32xf32>
    %cst_17 = arith.constant 1.000000e+00 : f32
    %20 = vector.broadcast %cst_17 : f32 to vector<8x32xf32>
    %21 = arith.addf %20, %19 : vector<8x32xf32>
    %22 = arith.divf %20, %21 : vector<8x32xf32>
    %23 = vector.extract_strided_slice %16 {offsets = [0, 32], sizes = [8, 32], strides = [1, 1]} : vector<8x128xf32> to vector<8x32xf32>
    %24 = arith.negf %23 : vector<8x32xf32>
    %25 = math.exp %24 : vector<8x32xf32>
    %cst_18 = arith.constant 1.000000e+00 : f32
    %26 = vector.broadcast %cst_18 : f32 to vector<8x32xf32>
    %27 = arith.addf %26, %25 : vector<8x32xf32>
    %28 = arith.divf %26, %27 : vector<8x32xf32>
    %29 = vector.extract_strided_slice %16 {offsets = [0, 64], sizes = [8, 32], strides = [1, 1]} : vector<8x128xf32> to vector<8x32xf32>
    %30 = math.tanh %29 : vector<8x32xf32>
    %31 = vector.extract_strided_slice %16 {offsets = [0, 96], sizes = [8, 32], strides = [1, 1]} : vector<8x128xf32> to vector<8x32xf32>
    %32 = arith.negf %31 : vector<8x32xf32>
    %33 = math.exp %32 : vector<8x32xf32>
    %cst_19 = arith.constant 1.000000e+00 : f32
    %34 = vector.broadcast %cst_19 : f32 to vector<8x32xf32>
    %35 = arith.addf %34, %33 : vector<8x32xf32>
    %36 = arith.divf %34, %35 : vector<8x32xf32>
    %37 = arith.mulf %28, %11 : vector<8x32xf32>
    %38 = arith.mulf %22, %30 : vector<8x32xf32>
    %39 = arith.addf %37, %38 : vector<8x32xf32>
    %40 = math.tanh %39 : vector<8x32xf32>
    %41 = arith.mulf %36, %40 : vector<8x32xf32>
    %c1_i32 = arith.constant 1 : i32
    %42 = arith.index_cast %c1_i32 : i32 to index
    %c0_20 = arith.constant 0 : index
    %c0_21 = arith.constant 0 : index
    %43 = vector.load %arg7[%42, %c0_20, %c0_21] : memref<8x8x128xf32, #tpu.memory_space<vmem>>, vector<1x8x128xf32>
    %44 = vector.shape_cast %43 : vector<1x8x128xf32> to vector<8x128xf32>
    %cst_22 = arith.constant dense<0.000000e+00> : vector<8x128xf32>
    %45 = tpu.matmul %41, %9, %cst_22 {dimension_numbers = #tpu.dot_dimension_numbers<[1], [0], [0], [1], [0, 0, 1, 1], [], []>} : vector<8x32xf32>, vector<32x128xf32>, vector<8x128xf32> -> vector<8x128xf32>
    %46 = arith.addf %44, %45 : vector<8x128xf32>
    %47 = vector.extract_strided_slice %46 {offsets = [0, 0], sizes = [8, 32], strides = [1, 1]} : vector<8x128xf32> to vector<8x32xf32>
    %48 = arith.negf %47 : vector<8x32xf32>
    %49 = math.exp %48 : vector<8x32xf32>
    %cst_23 = arith.constant 1.000000e+00 : f32
    %50 = vector.broadcast %cst_23 : f32 to vector<8x32xf32>
    %51 = arith.addf %50, %49 : vector<8x32xf32>
    %52 = arith.divf %50, %51 : vector<8x32xf32>
    %53 = vector.extract_strided_slice %46 {offsets = [0, 32], sizes = [8, 32], strides = [1, 1]} : vector<8x128xf32> to vector<8x32xf32>
    %54 = arith.negf %53 : vector<8x32xf32>
    %55 = math.exp %54 : vector<8x32xf32>
    %cst_24 = arith.constant 1.000000e+00 : f32
    %56 = vector.broadcast %cst_24 : f32 to vector<8x32xf32>
    %57 = arith.addf %56, %55 : vector<8x32xf32>
    %58 = arith.divf %56, %57 : vector<8x32xf32>
    %59 = vector.extract_strided_slice %46 {offsets = [0, 64], sizes = [8, 32], strides = [1, 1]} : vector<8x128xf32> to vector<8x32xf32>
    %60 = math.tanh %59 : vector<8x32xf32>
    %61 = vector.extract_strided_slice %46 {offsets = [0, 96], sizes = [8, 32], strides = [1, 1]} : vector<8x128xf32> to vector<8x32xf32>
    %62 = arith.negf %61 : vector<8x32xf32>
    %63 = math.exp %62 : vector<8x32xf32>
    %cst_25 = arith.constant 1.000000e+00 : f32
    %64 = vector.broadcast %cst_25 : f32 to vector<8x32xf32>
    %65 = arith.addf %64, %63 : vector<8x32xf32>
    %66 = arith.divf %64, %65 : vector<8x32xf32>
    %67 = arith.mulf %58, %39 : vector<8x32xf32>
    %68 = arith.mulf %52, %60 : vector<8x32xf32>
    %69 = arith.addf %67, %68 : vector<8x32xf32>
    %70 = math.tanh %69 : vector<8x32xf32>
    %71 = arith.mulf %66, %70 : vector<8x32xf32>
    %c2_i32 = arith.constant 2 : i32
    %72 = arith.index_cast %c2_i32 : i32 to index
    %c0_26 = arith.constant 0 : index
    %c0_27 = arith.constant 0 : index
    %73 = vector.load %arg7[%72, %c0_26, %c0_27] : memref<8x8x128xf32, #tpu.memory_space<vmem>>, vector<1x8x128xf32>
    %74 = vector.shape_cast %73 : vector<1x8x128xf32> to vector<8x128xf32>
    %cst_28 = arith.constant dense<0.000000e+00> : vector<8x128xf32>
    %75 = tpu.matmul %71, %9, %cst_28 {dimension_numbers = #tpu.dot_dimension_numbers<[1], [0], [0], [1], [0, 0, 1, 1], [], []>} : vector<8x32xf32>, vector<32x128xf32>, vector<8x128xf32> -> vector<8x128xf32>
    %76 = arith.addf %74, %75 : vector<8x128xf32>
    %77 = vector.extract_strided_slice %76 {offsets = [0, 0], sizes = [8, 32], strides = [1, 1]} : vector<8x128xf32> to vector<8x32xf32>
    %78 = arith.negf %77 : vector<8x32xf32>
    %79 = math.exp %78 : vector<8x32xf32>
    %cst_29 = arith.constant 1.000000e+00 : f32
    %80 = vector.broadcast %cst_29 : f32 to vector<8x32xf32>
    %81 = arith.addf %80, %79 : vector<8x32xf32>
    %82 = arith.divf %80, %81 : vector<8x32xf32>
    %83 = vector.extract_strided_slice %76 {offsets = [0, 32], sizes = [8, 32], strides = [1, 1]} : vector<8x128xf32> to vector<8x32xf32>
    %84 = arith.negf %83 : vector<8x32xf32>
    %85 = math.exp %84 : vector<8x32xf32>
    %cst_30 = arith.constant 1.000000e+00 : f32
    %86 = vector.broadcast %cst_30 : f32 to vector<8x32xf32>
    %87 = arith.addf %86, %85 : vector<8x32xf32>
    %88 = arith.divf %86, %87 : vector<8x32xf32>
    %89 = vector.extract_strided_slice %76 {offsets = [0, 64], sizes = [8, 32], strides = [1, 1]} : vector<8x128xf32> to vector<8x32xf32>
    %90 = math.tanh %89 : vector<8x32xf32>
    %91 = vector.extract_strided_slice %76 {offsets = [0, 96], sizes = [8, 32], strides = [1, 1]} : vector<8x128xf32> to vector<8x32xf32>
    %92 = arith.negf %91 : vector<8x32xf32>
    %93 = math.exp %92 : vector<8x32xf32>
    %cst_31 = arith.constant 1.000000e+00 : f32
    %94 = vector.broadcast %cst_31 : f32 to vector<8x32xf32>
    %95 = arith.addf %94, %93 : vector<8x32xf32>
    %96 = arith.divf %94, %95 : vector<8x32xf32>
    %97 = arith.mulf %88, %69 : vector<8x32xf32>
    %98 = arith.mulf %82, %90 : vector<8x32xf32>
    %99 = arith.addf %97, %98 : vector<8x32xf32>
    %100 = math.tanh %99 : vector<8x32xf32>
    %101 = arith.mulf %96, %100 : vector<8x32xf32>
    %c3_i32 = arith.constant 3 : i32
    %102 = arith.index_cast %c3_i32 : i32 to index
    %c0_32 = arith.constant 0 : index
    %c0_33 = arith.constant 0 : index
    %103 = vector.load %arg7[%102, %c0_32, %c0_33] : memref<8x8x128xf32, #tpu.memory_space<vmem>>, vector<1x8x128xf32>
    %104 = vector.shape_cast %103 : vector<1x8x128xf32> to vector<8x128xf32>
    %cst_34 = arith.constant dense<0.000000e+00> : vector<8x128xf32>
    %105 = tpu.matmul %101, %9, %cst_34 {dimension_numbers = #tpu.dot_dimension_numbers<[1], [0], [0], [1], [0, 0, 1, 1], [], []>} : vector<8x32xf32>, vector<32x128xf32>, vector<8x128xf32> -> vector<8x128xf32>
    %106 = arith.addf %104, %105 : vector<8x128xf32>
    %107 = vector.extract_strided_slice %106 {offsets = [0, 0], sizes = [8, 32], strides = [1, 1]} : vector<8x128xf32> to vector<8x32xf32>
    %108 = arith.negf %107 : vector<8x32xf32>
    %109 = math.exp %108 : vector<8x32xf32>
    %cst_35 = arith.constant 1.000000e+00 : f32
    %110 = vector.broadcast %cst_35 : f32 to vector<8x32xf32>
    %111 = arith.addf %110, %109 : vector<8x32xf32>
    %112 = arith.divf %110, %111 : vector<8x32xf32>
    %113 = vector.extract_strided_slice %106 {offsets = [0, 32], sizes = [8, 32], strides = [1, 1]} : vector<8x128xf32> to vector<8x32xf32>
    %114 = arith.negf %113 : vector<8x32xf32>
    %115 = math.exp %114 : vector<8x32xf32>
    %cst_36 = arith.constant 1.000000e+00 : f32
    %116 = vector.broadcast %cst_36 : f32 to vector<8x32xf32>
    %117 = arith.addf %116, %115 : vector<8x32xf32>
    %118 = arith.divf %116, %117 : vector<8x32xf32>
    %119 = vector.extract_strided_slice %106 {offsets = [0, 64], sizes = [8, 32], strides = [1, 1]} : vector<8x128xf32> to vector<8x32xf32>
    %120 = math.tanh %119 : vector<8x32xf32>
    %121 = vector.extract_strided_slice %106 {offsets = [0, 96], sizes = [8, 32], strides = [1, 1]} : vector<8x128xf32> to vector<8x32xf32>
    %122 = arith.negf %121 : vector<8x32xf32>
    %123 = math.exp %122 : vector<8x32xf32>
    %cst_37 = arith.constant 1.000000e+00 : f32
    %124 = vector.broadcast %cst_37 : f32 to vector<8x32xf32>
    %125 = arith.addf %124, %123 : vector<8x32xf32>
    %126 = arith.divf %124, %125 : vector<8x32xf32>
    %127 = arith.mulf %118, %99 : vector<8x32xf32>
    %128 = arith.mulf %112, %120 : vector<8x32xf32>
    %129 = arith.addf %127, %128 : vector<8x32xf32>
    %130 = math.tanh %129 : vector<8x32xf32>
    %131 = arith.mulf %126, %130 : vector<8x32xf32>
    %c4_i32 = arith.constant 4 : i32
    %132 = arith.index_cast %c4_i32 : i32 to index
    %c0_38 = arith.constant 0 : index
    %c0_39 = arith.constant 0 : index
    %133 = vector.load %arg7[%132, %c0_38, %c0_39] : memref<8x8x128xf32, #tpu.memory_space<vmem>>, vector<1x8x128xf32>
    %134 = vector.shape_cast %133 : vector<1x8x128xf32> to vector<8x128xf32>
    %cst_40 = arith.constant dense<0.000000e+00> : vector<8x128xf32>
    %135 = tpu.matmul %131, %9, %cst_40 {dimension_numbers = #tpu.dot_dimension_numbers<[1], [0], [0], [1], [0, 0, 1, 1], [], []>} : vector<8x32xf32>, vector<32x128xf32>, vector<8x128xf32> -> vector<8x128xf32>
    %136 = arith.addf %134, %135 : vector<8x128xf32>
    %137 = vector.extract_strided_slice %136 {offsets = [0, 0], sizes = [8, 32], strides = [1, 1]} : vector<8x128xf32> to vector<8x32xf32>
    %138 = arith.negf %137 : vector<8x32xf32>
    %139 = math.exp %138 : vector<8x32xf32>
    %cst_41 = arith.constant 1.000000e+00 : f32
    %140 = vector.broadcast %cst_41 : f32 to vector<8x32xf32>
    %141 = arith.addf %140, %139 : vector<8x32xf32>
    %142 = arith.divf %140, %141 : vector<8x32xf32>
    %143 = vector.extract_strided_slice %136 {offsets = [0, 32], sizes = [8, 32], strides = [1, 1]} : vector<8x128xf32> to vector<8x32xf32>
    %144 = arith.negf %143 : vector<8x32xf32>
    %145 = math.exp %144 : vector<8x32xf32>
    %cst_42 = arith.constant 1.000000e+00 : f32
    %146 = vector.broadcast %cst_42 : f32 to vector<8x32xf32>
    %147 = arith.addf %146, %145 : vector<8x32xf32>
    %148 = arith.divf %146, %147 : vector<8x32xf32>
    %149 = vector.extract_strided_slice %136 {offsets = [0, 64], sizes = [8, 32], strides = [1, 1]} : vector<8x128xf32> to vector<8x32xf32>
    %150 = math.tanh %149 : vector<8x32xf32>
    %151 = vector.extract_strided_slice %136 {offsets = [0, 96], sizes = [8, 32], strides = [1, 1]} : vector<8x128xf32> to vector<8x32xf32>
    %152 = arith.negf %151 : vector<8x32xf32>
    %153 = math.exp %152 : vector<8x32xf32>
    %cst_43 = arith.constant 1.000000e+00 : f32
    %154 = vector.broadcast %cst_43 : f32 to vector<8x32xf32>
    %155 = arith.addf %154, %153 : vector<8x32xf32>
    %156 = arith.divf %154, %155 : vector<8x32xf32>
    %157 = arith.mulf %148, %129 : vector<8x32xf32>
    %158 = arith.mulf %142, %150 : vector<8x32xf32>
    %159 = arith.addf %157, %158 : vector<8x32xf32>
    %160 = math.tanh %159 : vector<8x32xf32>
    %161 = arith.mulf %156, %160 : vector<8x32xf32>
    %c5_i32 = arith.constant 5 : i32
    %162 = arith.index_cast %c5_i32 : i32 to index
    %c0_44 = arith.constant 0 : index
    %c0_45 = arith.constant 0 : index
    %163 = vector.load %arg7[%162, %c0_44, %c0_45] : memref<8x8x128xf32, #tpu.memory_space<vmem>>, vector<1x8x128xf32>
    %164 = vector.shape_cast %163 : vector<1x8x128xf32> to vector<8x128xf32>
    %cst_46 = arith.constant dense<0.000000e+00> : vector<8x128xf32>
    %165 = tpu.matmul %161, %9, %cst_46 {dimension_numbers = #tpu.dot_dimension_numbers<[1], [0], [0], [1], [0, 0, 1, 1], [], []>} : vector<8x32xf32>, vector<32x128xf32>, vector<8x128xf32> -> vector<8x128xf32>
    %166 = arith.addf %164, %165 : vector<8x128xf32>
    %167 = vector.extract_strided_slice %166 {offsets = [0, 0], sizes = [8, 32], strides = [1, 1]} : vector<8x128xf32> to vector<8x32xf32>
    %168 = arith.negf %167 : vector<8x32xf32>
    %169 = math.exp %168 : vector<8x32xf32>
    %cst_47 = arith.constant 1.000000e+00 : f32
    %170 = vector.broadcast %cst_47 : f32 to vector<8x32xf32>
    %171 = arith.addf %170, %169 : vector<8x32xf32>
    %172 = arith.divf %170, %171 : vector<8x32xf32>
    %173 = vector.extract_strided_slice %166 {offsets = [0, 32], sizes = [8, 32], strides = [1, 1]} : vector<8x128xf32> to vector<8x32xf32>
    %174 = arith.negf %173 : vector<8x32xf32>
    %175 = math.exp %174 : vector<8x32xf32>
    %cst_48 = arith.constant 1.000000e+00 : f32
    %176 = vector.broadcast %cst_48 : f32 to vector<8x32xf32>
    %177 = arith.addf %176, %175 : vector<8x32xf32>
    %178 = arith.divf %176, %177 : vector<8x32xf32>
    %179 = vector.extract_strided_slice %166 {offsets = [0, 64], sizes = [8, 32], strides = [1, 1]} : vector<8x128xf32> to vector<8x32xf32>
    %180 = math.tanh %179 : vector<8x32xf32>
    %181 = vector.extract_strided_slice %166 {offsets = [0, 96], sizes = [8, 32], strides = [1, 1]} : vector<8x128xf32> to vector<8x32xf32>
    %182 = arith.negf %181 : vector<8x32xf32>
    %183 = math.exp %182 : vector<8x32xf32>
    %cst_49 = arith.constant 1.000000e+00 : f32
    %184 = vector.broadcast %cst_49 : f32 to vector<8x32xf32>
    %185 = arith.addf %184, %183 : vector<8x32xf32>
    %186 = arith.divf %184, %185 : vector<8x32xf32>
    %187 = arith.mulf %178, %159 : vector<8x32xf32>
    %188 = arith.mulf %172, %180 : vector<8x32xf32>
    %189 = arith.addf %187, %188 : vector<8x32xf32>
    %190 = math.tanh %189 : vector<8x32xf32>
    %191 = arith.mulf %186, %190 : vector<8x32xf32>
    %c6_i32 = arith.constant 6 : i32
    %192 = arith.index_cast %c6_i32 : i32 to index
    %c0_50 = arith.constant 0 : index
    %c0_51 = arith.constant 0 : index
    %193 = vector.load %arg7[%192, %c0_50, %c0_51] : memref<8x8x128xf32, #tpu.memory_space<vmem>>, vector<1x8x128xf32>
    %194 = vector.shape_cast %193 : vector<1x8x128xf32> to vector<8x128xf32>
    %cst_52 = arith.constant dense<0.000000e+00> : vector<8x128xf32>
    %195 = tpu.matmul %191, %9, %cst_52 {dimension_numbers = #tpu.dot_dimension_numbers<[1], [0], [0], [1], [0, 0, 1, 1], [], []>} : vector<8x32xf32>, vector<32x128xf32>, vector<8x128xf32> -> vector<8x128xf32>
    %196 = arith.addf %194, %195 : vector<8x128xf32>
    %197 = vector.extract_strided_slice %196 {offsets = [0, 0], sizes = [8, 32], strides = [1, 1]} : vector<8x128xf32> to vector<8x32xf32>
    %198 = arith.negf %197 : vector<8x32xf32>
    %199 = math.exp %198 : vector<8x32xf32>
    %cst_53 = arith.constant 1.000000e+00 : f32
    %200 = vector.broadcast %cst_53 : f32 to vector<8x32xf32>
    %201 = arith.addf %200, %199 : vector<8x32xf32>
    %202 = arith.divf %200, %201 : vector<8x32xf32>
    %203 = vector.extract_strided_slice %196 {offsets = [0, 32], sizes = [8, 32], strides = [1, 1]} : vector<8x128xf32> to vector<8x32xf32>
    %204 = arith.negf %203 : vector<8x32xf32>
    %205 = math.exp %204 : vector<8x32xf32>
    %cst_54 = arith.constant 1.000000e+00 : f32
    %206 = vector.broadcast %cst_54 : f32 to vector<8x32xf32>
    %207 = arith.addf %206, %205 : vector<8x32xf32>
    %208 = arith.divf %206, %207 : vector<8x32xf32>
    %209 = vector.extract_strided_slice %196 {offsets = [0, 64], sizes = [8, 32], strides = [1, 1]} : vector<8x128xf32> to vector<8x32xf32>
    %210 = math.tanh %209 : vector<8x32xf32>
    %211 = vector.extract_strided_slice %196 {offsets = [0, 96], sizes = [8, 32], strides = [1, 1]} : vector<8x128xf32> to vector<8x32xf32>
    %212 = arith.negf %211 : vector<8x32xf32>
    %213 = math.exp %212 : vector<8x32xf32>
    %cst_55 = arith.constant 1.000000e+00 : f32
    %214 = vector.broadcast %cst_55 : f32 to vector<8x32xf32>
    %215 = arith.addf %214, %213 : vector<8x32xf32>
    %216 = arith.divf %214, %215 : vector<8x32xf32>
    %217 = arith.mulf %208, %189 : vector<8x32xf32>
    %218 = arith.mulf %202, %210 : vector<8x32xf32>
    %219 = arith.addf %217, %218 : vector<8x32xf32>
    %220 = math.tanh %219 : vector<8x32xf32>
    %221 = arith.mulf %216, %220 : vector<8x32xf32>
    %c7_i32 = arith.constant 7 : i32
    %222 = arith.index_cast %c7_i32 : i32 to index
    %c0_56 = arith.constant 0 : index
    %c0_57 = arith.constant 0 : index
    %223 = vector.load %arg7[%222, %c0_56, %c0_57] : memref<8x8x128xf32, #tpu.memory_space<vmem>>, vector<1x8x128xf32>
    %224 = vector.shape_cast %223 : vector<1x8x128xf32> to vector<8x128xf32>
    %cst_58 = arith.constant dense<0.000000e+00> : vector<8x128xf32>
    %225 = tpu.matmul %221, %9, %cst_58 {dimension_numbers = #tpu.dot_dimension_numbers<[1], [0], [0], [1], [0, 0, 1, 1], [], []>} : vector<8x32xf32>, vector<32x128xf32>, vector<8x128xf32> -> vector<8x128xf32>
    %226 = arith.addf %224, %225 : vector<8x128xf32>
    %227 = vector.extract_strided_slice %226 {offsets = [0, 0], sizes = [8, 32], strides = [1, 1]} : vector<8x128xf32> to vector<8x32xf32>
    %228 = arith.negf %227 : vector<8x32xf32>
    %229 = math.exp %228 : vector<8x32xf32>
    %cst_59 = arith.constant 1.000000e+00 : f32
    %230 = vector.broadcast %cst_59 : f32 to vector<8x32xf32>
    %231 = arith.addf %230, %229 : vector<8x32xf32>
    %232 = arith.divf %230, %231 : vector<8x32xf32>
    %233 = vector.extract_strided_slice %226 {offsets = [0, 32], sizes = [8, 32], strides = [1, 1]} : vector<8x128xf32> to vector<8x32xf32>
    %234 = arith.negf %233 : vector<8x32xf32>
    %235 = math.exp %234 : vector<8x32xf32>
    %cst_60 = arith.constant 1.000000e+00 : f32
    %236 = vector.broadcast %cst_60 : f32 to vector<8x32xf32>
    %237 = arith.addf %236, %235 : vector<8x32xf32>
    %238 = arith.divf %236, %237 : vector<8x32xf32>
    %239 = vector.extract_strided_slice %226 {offsets = [0, 64], sizes = [8, 32], strides = [1, 1]} : vector<8x128xf32> to vector<8x32xf32>
    %240 = math.tanh %239 : vector<8x32xf32>
    %241 = vector.extract_strided_slice %226 {offsets = [0, 96], sizes = [8, 32], strides = [1, 1]} : vector<8x128xf32> to vector<8x32xf32>
    %242 = arith.negf %241 : vector<8x32xf32>
    %243 = math.exp %242 : vector<8x32xf32>
    %cst_61 = arith.constant 1.000000e+00 : f32
    %244 = vector.broadcast %cst_61 : f32 to vector<8x32xf32>
    %245 = arith.addf %244, %243 : vector<8x32xf32>
    %246 = arith.divf %244, %245 : vector<8x32xf32>
    %247 = arith.mulf %238, %219 : vector<8x32xf32>
    %248 = arith.mulf %232, %240 : vector<8x32xf32>
    %249 = arith.addf %247, %248 : vector<8x32xf32>
    %250 = math.tanh %249 : vector<8x32xf32>
    %251 = arith.mulf %246, %250 : vector<8x32xf32>
    %c8_i32 = arith.constant 8 : i32
    %c0_62 = arith.constant 0 : index
    %c0_63 = arith.constant 0 : index
    %252 = vector.load %arg4[%c0_62, %c0_63] : memref<32x128xf32, #tpu.memory_space<vmem>>, vector<32x128xf32>
    %cst_64 = arith.constant dense<0.000000e+00> : vector<8x128xf32>
    %253 = tpu.matmul %251, %252, %cst_64 {dimension_numbers = #tpu.dot_dimension_numbers<[1], [0], [0], [1], [0, 0, 1, 1], [], []>} : vector<8x32xf32>, vector<32x128xf32>, vector<8x128xf32> -> vector<8x128xf32>
    %c0_65 = arith.constant 0 : index
    %c0_66 = arith.constant 0 : index
    %254 = vector.load %arg5[%c0_65, %c0_66] : memref<1x128xf32, #tpu.memory_space<vmem>>, vector<1x128xf32>
    %255 = vector.broadcast %254 : vector<1x128xf32> to vector<8x128xf32>
    %256 = arith.addf %253, %255 : vector<8x128xf32>
    %c0_67 = arith.constant 0 : index
    %c0_68 = arith.constant 0 : index
    %257 = vector.load %arg6[%c0_67, %c0_68] : memref<8x128xf32, #tpu.memory_space<vmem>>, vector<8x128xf32>
    tpu.vector_store %arg6[%c0_67, %c0_68], %256 {strides = array<i32>} : memref<8x128xf32, #tpu.memory_space<vmem>>, vector<8x128xf32>,
    return
  }
}

</mosaic_0001>

<bundles_post_ra>
// kernel: tpu_custom_call.1
= control target key start
LH: loop header
LB: loop body
LE: loop exit
PB: predicated region body
PF: predicated region fallthrough
CT: control target
= control target key end

     0   :  { %v1286_v1 = vmov 0.0   ;;  %vm1287_vm0 = vmmov 0   ;;  %v1288_v4 = vmov 0   ;;  %s1542_s0 = inlined_call_operand.vmem [shape: f32[8,8,1], index: 0, kind: input, shape index: {}]   ;;  %s1543_s1 = inlined_call_operand.vmem [shape: f32[1,1,128], index: 1, kind: input, shape index: {}]   ;;  %s1544_s2 = inlined_call_operand.vmem [shape: f32[1,1,128], index: 2, kind: input, shape index: {}]   ;;  %s1545_s3 = inlined_call_operand.vmem [shape: f32[32,128], index: 3, kind: input, shape index: {}]   ;;  %s1546_s4 = inlined_call_operand.vmem [shape: f32[32,128], index: 4, kind: input, shape index: {}]   ;;  %s1547_s5 = inlined_call_operand.vmem [shape: f32[1,128], index: 5, kind: input, shape index: {}]   ;;  %s1548_s6 = inlined_call_operand.hbm [shape: f32[8,128], index: 6, kind: output, shape index: {}]  }
   0x1   :  { %v1330_v0 = vld [vmem:[%s1545_s3 + $0x18] sm:$0xff]  ;;  %1093 = vmatprep.subr.mxu0 %v1286_v1  ;;  %v1336_v2 = vld [vmem:[%s1545_s3 + $0x10] sm:$0xff]  ;;  %1101 = vmatprep.mubr.msk.f32.mxu0 %vm1287_vm0, %v1286_v1  ;;  %v24_v3 = vld [vmem:[%s1542_s0] sm:$0xff] }
   0x2   :  { %1094 = vmatpush3.msra.mxu0 %v1330_v0  ;;  %1198 = vset.pattern.permute.xlu0 %v1288_v4 }
   0x3   :  { %11 = vsyncpa [#allocation4], 0  ;;  %1095 = vmatprep.subr.mxu0 %v1286_v1  ;;  %v1348_v5 = vld [vmem:[%s1545_s3 + $0x8] sm:$0xff]  ;;  %35 = vperm.xlu0 %1198, %v24_v3   ;;  %v1356_v6 = vld [vmem:[%s1545_s3] sm:$0xff]  ;;  %s1289_s10 = smov 64   ;;  %vm115_vm1 = vcmask 261120  }
   0x4   :  { %1096 = vmatpush3.msra.mxu0 %v1336_v2  ;;  %1104 = vmatprep.subr.mxu1 %v1286_v1  ;;  %v1386_v7 = vld [vmem:[%s1543_s1] ss:$0 sm:$0xff]  ;;  %s1290_s1 = smov 32   ;;  %v25_v26 = vld [vmem:[%s1542_s0 + $0x8] sm:$0xff]  ;;  %v26_v47 = vld [vmem:[%s1542_s0 + $0x10] sm:$0xff]  ;;  %s1291_s8 = smov [#allocation3]  }
   0x5   :  { %1097 = vmatprep.subr.mxu0 %v1286_v1  ;;  %1105 = vmatpush3.msra.mxu1 %v1330_v0  ;;  %v1392_v10 = vld [vmem:[%s1544_s2] ss:$0 sm:$0xff] }
   0x6   :  { %1098 = vmatpush3.msra.mxu0 %v1348_v5  ;;  %1106 = vmatprep.subr.mxu1 %v1286_v1 }
   0x7   :  { %1099 = vmatprep.subr.mxu0 %v1286_v1  ;;  %1107 = vmatpush3.msra.mxu1 %v1336_v2 }
   0x8   :  { %1100 = vmatpush3.msra.mxu0 %v1356_v6  ;;  %1108 = vmatprep.subr.mxu1 %v1286_v1 }
   0x9   :  { %1102 = vmatmul.mubr.f32.vlgmr.msra.gmra.mxu0 %v1286_v1  ;;  %1109 = vmatpush3.msra.mxu1 %v1348_v5 }
   0xa   :  { %1110 = vmatprep.subr.mxu1 %v1286_v1  ;;  %1112 = vmatprep.mubr.msk.f32.mxu1 %vm1287_vm0, %v1286_v1 }
   0xb   :  { %1111 = vmatpush3.msra.mxu1 %v1356_v6  ;;  %1199 = vset.pattern.permute.xlu1 %v1288_v4 }
   0xc   :  { %1115 = vmatprep.subr.mxu0 %v1286_v1  ;;  %1123 = vmatprep.mubr.msk.f32.mxu0 %vm1287_vm0, %v1286_v1 }
   0xd   :  { %1116 = vmatpush3.msra.mxu0 %v1330_v0  ;;  %1126 = vmatprep.subr.mxu1 %v1286_v1 }
   0xe   :  { %1117 = vmatprep.subr.mxu0 %v1286_v1 }
   0xf   :  { %1118 = vmatpush3.msra.mxu0 %v1336_v2 }
  0x10   :  { %1119 = vmatprep.subr.mxu0 %v1286_v1 }
  0x11   :  { %1120 = vmatpush3.msra.mxu0 %v1348_v5 }
  0x12   :  { %1121 = vmatprep.subr.mxu0 %v1286_v1 }
  0x13   :  { %1122 = vmatpush3.msra.mxu0 %v1356_v6 }
  0x14   :  { %1137 = vmatprep.subr.mxu0 %v1286_v1 }
  0x7e   :  { %v36_v8 = vpop.permute.xlu0 %35 }
  0x7f   :  { %v79_v9 = vmul.f32 %v1386_v7, %v36_v8 }
  0x81   :  { %v94_v11 = vadd.f32 %v1392_v10, %v79_v9 }
  0xc9   :  { %v185_v12 = vpop.f32.mrf.mxu0 }
  0xca   :  { %v189_v13 = vadd.f32 %v185_v12, %v94_v11  ;;  %v27_v11 = vld [vmem:[%s1542_s0 + $0x18] sm:$0xff] }
  0xcb   :  { %v1103_v14 = vpop.f32.mrf.mxu0 }
  0xcc   :  { %1200 = vtanh.f32 %v189_v13  ;;  %v1031_v16 = vmul.f32 -1.442695, %v189_v13 }
  0xce   :  { %1202 = vpow2.f32 %v1031_v16 }
  0xd9   :  { %v1201_v15 = vpop.eup %1200 }
  0xda   :  { %199 = vrot.lane.b32.xlu0 %v1201_v15, %s1289_s10 }
  0xdb   :  { %v1203_v17 = vpop.eup %1202 }
  0xdc   :  { %v193_v18 = vadd.f32 1.0, %v1203_v17 }
  0xde   :  { %1204 = vrcp.f32 %v193_v18 }
  0xeb   :  { %v1205_v19 = vpop.eup %1204 }
  0xec   :  { %v197_v22 = vmul.f32 0.0, %v1205_v19 }
 0x14c   :  { %v200_v20 = vpop.permute.xlu0 %199 }
 0x14d   :  { %v202_v21 = vmul.f32 %v1205_v19, %v200_v20 }
 0x14f   :  { %204 = vrot.lane.b32.xlu1 %v202_v21, %s1290_s1 }
 0x1c1   :  { %v205_v23 = vpop.permute.xlu1 %204 }
 0x1c2   :  { %v207_v24 = vadd.f32 %v205_v23, %v197_v22 }
 0x1c4   :  { %1206 = vtanh.f32 %v207_v24 }
 0x1d1   :  { %v1207_v25 = vpop.eup %1206 }
 0x1d2   :  { %210 = vrot.lane.b32.xlu1 %v1207_v25, %s1289_s10 }
 0x1d6   :  { %40 = vperm.xlu1 %1199, %v25_v26  }
 0x244   :  { %v211_v27 = vpop.permute.xlu1 %210 }
 0x245   :  { %v213_v28 = vmul.f32 %v1205_v19, %v211_v27 }
 0x247   :  { %217 = vrot.lane.b32.xlu0 %v213_v28, %s1290_s1 }
 0x251   :  { %v41_v30 = vpop.permute.xlu1 %40 }
 0x252   :  { %v80_v31 = vmul.f32 %v1386_v7, %v41_v30 }
 0x254   :  { %v95_v32 = vadd.f32 %v1392_v10, %v80_v31 }
 0x2b9   :  { %v218_v29 = vpop.permute.xlu0 %217 }
 0x2ba   :  { %1113 = vmatmul.mubr.msk.f32.vlgmr.msra.gmra.mxu1 %vm115_vm1, %v218_v29 }
 0x2bb   :  { %1127 = vmatpush3.msra.mxu1 %v1330_v0  ;;  %1134 = vmatprep.mubr.msk.f32.mxu1 %vm1287_vm0, %v1286_v1 }
 0x2bc   :  { %1128 = vmatprep.subr.mxu1 %v1286_v1 }
 0x2bd   :  { %1129 = vmatpush3.msra.mxu1 %v1336_v2 }
 0x2be   :  { %1130 = vmatprep.subr.mxu1 %v1286_v1 }
 0x2bf   :  { %1131 = vmatpush3.msra.mxu1 %v1348_v5 }
 0x2c0   :  { %1132 = vmatprep.subr.mxu1 %v1286_v1 }
 0x2c1   :  { %1133 = vmatpush3.msra.mxu1 %v1356_v6 }
 0x2c2   :  { %1148 = vmatprep.subr.mxu1 %v1286_v1 }
 0x37a   :  { %v287_v33 = vpop.f32.mrf.mxu1 }
 0x37b   :  { %v291_v34 = vadd.f32 %v287_v33, %v95_v32  ;;  %v28_v32 = vld [vmem:[%s1542_s0 + $0x20] sm:$0xff] }
 0x37c   :  { %v1114_v35 = vpop.f32.mrf.mxu1 }
 0x37d   :  { %1208 = vtanh.f32 %v291_v34  ;;  %v1033_v37 = vmul.f32 -1.442695, %v291_v34 }
 0x37f   :  { %1210 = vpow2.f32 %v1033_v37 }
 0x38a   :  { %v1209_v36 = vpop.eup %1208 }
 0x38b   :  { %301 = vrot.lane.b32.xlu0 %v1209_v36, %s1289_s10 }
 0x38c   :  { %v1211_v38 = vpop.eup %1210 }
 0x38d   :  { %v295_v39 = vadd.f32 1.0, %v1211_v38 }
 0x38f   :  { %1212 = vrcp.f32 %v295_v39 }
 0x39c   :  { %v1213_v40 = vpop.eup %1212 }
 0x39d   :  { %v299_v43 = vmul.f32 %v1213_v40, %v207_v24 }
 0x3fd   :  { %v302_v41 = vpop.permute.xlu0 %301 }
 0x3fe   :  { %v304_v42 = vmul.f32 %v1213_v40, %v302_v41 }
 0x400   :  { %306 = vrot.lane.b32.xlu1 %v304_v42, %s1290_s1 }
 0x472   :  { %v307_v44 = vpop.permute.xlu1 %306 }
 0x473   :  { %v309_v45 = vadd.f32 %v307_v44, %v299_v43 }
 0x475   :  { %1214 = vtanh.f32 %v309_v45 }
 0x482   :  { %v1215_v46 = vpop.eup %1214 }
 0x483   :  { %312 = vrot.lane.b32.xlu0 %v1215_v46, %s1289_s10 }
 0x487   :  { %45 = vperm.xlu0 %1198, %v26_v47  }
 0x4f5   :  { %v313_v48 = vpop.permute.xlu0 %312 }
 0x4f6   :  { %v315_v49 = vmul.f32 %v1213_v40, %v313_v48 }
 0x4f8   :  { %319 = vrot.lane.b32.xlu1 %v315_v49, %s1290_s1 }
 0x502   :  { %v46_v51 = vpop.permute.xlu0 %45 }
 0x503   :  { %v81_v52 = vmul.f32 %v1386_v7, %v46_v51 }
 0x505   :  { %v96_v53 = vadd.f32 %v1392_v10, %v81_v52 }
 0x56a   :  { %v320_v50 = vpop.permute.xlu1 %319 }
 0x56b   :  { %1124 = vmatmul.mubr.msk.f32.vlgmr.msra.gmra.mxu0 %vm115_vm1, %v320_v50 }
 0x56c   :  { %1138 = vmatpush3.msra.mxu0 %v1330_v0  ;;  %1145 = vmatprep.mubr.msk.f32.mxu0 %vm1287_vm0, %v1286_v1 }
 0x56d   :  { %1139 = vmatprep.subr.mxu0 %v1286_v1 }
 0x56e   :  { %1140 = vmatpush3.msra.mxu0 %v1336_v2 }
 0x56f   :  { %1141 = vmatprep.subr.mxu0 %v1286_v1 }
 0x570   :  { %1142 = vmatpush3.msra.mxu0 %v1348_v5 }
 0x571   :  { %1143 = vmatprep.subr.mxu0 %v1286_v1 }
 0x572   :  { %1144 = vmatpush3.msra.mxu0 %v1356_v6 }
 0x573   :  { %1159 = vmatprep.subr.mxu0 %v1286_v1 }
 0x62b   :  { %v389_v54 = vpop.f32.mrf.mxu0 }
 0x62c   :  { %v393_v55 = vadd.f32 %v389_v54, %v96_v53  ;;  %v29_v53 = vld [vmem:[%s1542_s0 + $0x28] sm:$0xff] }
 0x62d   :  { %v1125_v56 = vpop.f32.mrf.mxu0 }
 0x62e   :  { %1216 = vtanh.f32 %v393_v55  ;;  %v1035_v58 = vmul.f32 -1.442695, %v393_v55 }
 0x630   :  { %1218 = vpow2.f32 %v1035_v58 }
 0x63b   :  { %v1217_v57 = vpop.eup %1216 }
 0x63c   :  { %403 = vrot.lane.b32.xlu1 %v1217_v57, %s1289_s10 }
 0x63d   :  { %v1219_v59 = vpop.eup %1218 }
 0x63e   :  { %v397_v60 = vadd.f32 1.0, %v1219_v59 }
 0x640   :  { %1220 = vrcp.f32 %v397_v60 }
 0x64d   :  { %v1221_v61 = vpop.eup %1220 }
 0x64e   :  { %v401_v3 = vmul.f32 %v1221_v61, %v309_v45 }
 0x6ae   :  { %v404_v62 = vpop.permute.xlu1 %403 }
 0x6af   :  { %v406_v63 = vmul.f32 %v1221_v61, %v404_v62 }
 0x6b1   :  { %408 = vrot.lane.b32.xlu0 %v406_v63, %s1290_s1 }
 0x723   :  { %v409_v4 = vpop.permute.xlu0 %408 }
 0x724   :  { %v411_v8 = vadd.f32 %v409_v4, %v401_v3 }
 0x726   :  { %1222 = vtanh.f32 %v411_v8 }
 0x733   :  { %v1223_v9 = vpop.eup %1222 }
 0x734   :  { %414 = vrot.lane.b32.xlu1 %v1223_v9, %s1289_s10 }
 0x738   :  { %50 = vperm.xlu1 %1199, %v27_v11  }
 0x7a6   :  { %v415_v12 = vpop.permute.xlu1 %414 }
 0x7a7   :  { %v417_v13 = vmul.f32 %v1221_v61, %v415_v12 }
 0x7a9   :  { %421 = vrot.lane.b32.xlu0 %v417_v13, %s1290_s1  ;;  %v30_v13 = vld [vmem:[%s1542_s0 + $0x30] sm:$0xff] }
 0x7b3   :  { %v51_v15 = vpop.permute.xlu1 %50 }
 0x7b4   :  { %v82_v16 = vmul.f32 %v1386_v7, %v51_v15 }
 0x7b6   :  { %v97_v17 = vadd.f32 %v1392_v10, %v82_v16 }
 0x81b   :  { %v422_v14 = vpop.permute.xlu0 %421 }
 0x81c   :  { %1135 = vmatmul.mubr.msk.f32.vlgmr.msra.gmra.mxu1 %vm115_vm1, %v422_v14 }
 0x81d   :  { %1149 = vmatpush3.msra.mxu1 %v1330_v0  ;;  %1156 = vmatprep.mubr.msk.f32.mxu1 %vm1287_vm0, %v1286_v1 }
 0x81e   :  { %1150 = vmatprep.subr.mxu1 %v1286_v1 }
 0x81f   :  { %1151 = vmatpush3.msra.mxu1 %v1336_v2 }
 0x820   :  { %1152 = vmatprep.subr.mxu1 %v1286_v1 }
 0x821   :  { %1153 = vmatpush3.msra.mxu1 %v1348_v5 }
 0x822   :  { %1154 = vmatprep.subr.mxu1 %v1286_v1 }
 0x823   :  { %1155 = vmatpush3.msra.mxu1 %v1356_v6 }
 0x824   :  { %1170 = vmatprep.subr.mxu1 %v1286_v1 }
 0x8dc   :  { %v491_v18 = vpop.f32.mrf.mxu1 }
 0x8dd   :  { %v495_v19 = vadd.f32 %v491_v18, %v97_v17 }
 0x8de   :  { %v1136_v20 = vpop.f32.mrf.mxu1 }
 0x8df   :  { %1224 = vtanh.f32 %v495_v19  ;;  %v1037_v22 = vmul.f32 -1.442695, %v495_v19 }
 0x8e1   :  { %1226 = vpow2.f32 %v1037_v22 }
 0x8ec   :  { %v1225_v21 = vpop.eup %1224 }
 0x8ed   :  { %505 = vrot.lane.b32.xlu0 %v1225_v21, %s1289_s10 }
 0x8ee   :  { %v1227_v23 = vpop.eup %1226 }
 0x8ef   :  { %v499_v24 = vadd.f32 1.0, %v1227_v23 }
 0x8f1   :  { %1228 = vrcp.f32 %v499_v24 }
 0x8fe   :  { %v1229_v25 = vpop.eup %1228 }
 0x8ff   :  { %v503_v28 = vmul.f32 %v1229_v25, %v411_v8 }
 0x95f   :  { %v506_v26 = vpop.permute.xlu0 %505 }
 0x960   :  { %v508_v27 = vmul.f32 %v1229_v25, %v506_v26 }
 0x962   :  { %510 = vrot.lane.b32.xlu1 %v508_v27, %s1290_s1 }
 0x9d4   :  { %v511_v29 = vpop.permute.xlu1 %510 }
 0x9d5   :  { %v513_v30 = vadd.f32 %v511_v29, %v503_v28 }
 0x9d7   :  { %1230 = vtanh.f32 %v513_v30 }
 0x9e4   :  { %v1231_v31 = vpop.eup %1230 }
 0x9e5   :  { %516 = vrot.lane.b32.xlu0 %v1231_v31, %s1289_s10 }
 0x9e9   :  { %55 = vperm.xlu0 %1198, %v28_v32  }
 0xa57   :  { %v517_v33 = vpop.permute.xlu0 %516 }
 0xa58   :  { %v519_v34 = vmul.f32 %v1229_v25, %v517_v33 }
 0xa5a   :  { %523 = vrot.lane.b32.xlu1 %v519_v34, %s1290_s1  ;;  %v31_v34 = vld [vmem:[%s1542_s0 + $0x38] sm:$0xff] }
 0xa64   :  { %v56_v36 = vpop.permute.xlu0 %55 }
 0xa65   :  { %v83_v37 = vmul.f32 %v1386_v7, %v56_v36 }
 0xa67   :  { %v98_v38 = vadd.f32 %v1392_v10, %v83_v37 }
 0xacc   :  { %v524_v35 = vpop.permute.xlu1 %523 }
 0xacd   :  { %1146 = vmatmul.mubr.msk.f32.vlgmr.msra.gmra.mxu0 %vm115_vm1, %v524_v35 }
 0xace   :  { %1160 = vmatpush3.msra.mxu0 %v1330_v0  ;;  %1167 = vmatprep.mubr.msk.f32.mxu0 %vm1287_vm0, %v1286_v1 }
 0xacf   :  { %1161 = vmatprep.subr.mxu0 %v1286_v1 }
 0xad0   :  { %1162 = vmatpush3.msra.mxu0 %v1336_v2 }
 0xad1   :  { %1163 = vmatprep.subr.mxu0 %v1286_v1 }
 0xad2   :  { %1164 = vmatpush3.msra.mxu0 %v1348_v5 }
 0xad3   :  { %1165 = vmatprep.subr.mxu0 %v1286_v1 }
 0xad4   :  { %1166 = vmatpush3.msra.mxu0 %v1356_v6 }
 0xad5   :  { %1181 = vmatprep.subr.mxu0 %v1286_v1 }
 0xb8d   :  { %v593_v39 = vpop.f32.mrf.mxu0 }
 0xb8e   :  { %v597_v40 = vadd.f32 %v593_v39, %v98_v38 }
 0xb8f   :  { %v1147_v41 = vpop.f32.mrf.mxu0 }
 0xb90   :  { %1232 = vtanh.f32 %v597_v40  ;;  %v1039_v43 = vmul.f32 -1.442695, %v597_v40 }
 0xb92   :  { %1234 = vpow2.f32 %v1039_v43 }
 0xb9d   :  { %v1233_v42 = vpop.eup %1232 }
 0xb9e   :  { %607 = vrot.lane.b32.xlu1 %v1233_v42, %s1289_s10 }
 0xb9f   :  { %v1235_v44 = vpop.eup %1234 }
 0xba0   :  { %v601_v45 = vadd.f32 1.0, %v1235_v44 }
 0xba2   :  { %1236 = vrcp.f32 %v601_v45 }
 0xbaf   :  { %v1237_v46 = vpop.eup %1236 }
 0xbb0   :  { %v605_v49 = vmul.f32 %v1237_v46, %v513_v30 }
 0xc10   :  { %v608_v47 = vpop.permute.xlu1 %607 }
 0xc11   :  { %v610_v48 = vmul.f32 %v1237_v46, %v608_v47 }
 0xc13   :  { %612 = vrot.lane.b32.xlu0 %v610_v48, %s1290_s1 }
 0xc85   :  { %v613_v50 = vpop.permute.xlu0 %612 }
 0xc86   :  { %v615_v51 = vadd.f32 %v613_v50, %v605_v49 }
 0xc88   :  { %1238 = vtanh.f32 %v615_v51 }
 0xc95   :  { %v1239_v52 = vpop.eup %1238 }
 0xc96   :  { %618 = vrot.lane.b32.xlu1 %v1239_v52, %s1289_s10  ;;  %v931_v52 = vld [vmem:[%s1546_s4 + $0x18] sm:$0xff] }
 0xc9a   :  { %60 = vperm.xlu1 %1199, %v29_v53   ;;  %v930_v53 = vld [vmem:[%s1546_s4 + $0x10] sm:$0xff] }
 0xd08   :  { %v619_v54 = vpop.permute.xlu1 %618 }
 0xd09   :  { %v621_v55 = vmul.f32 %v1237_v46, %v619_v54  ;;  %v929_v54 = vld [vmem:[%s1546_s4 + $0x8] sm:$0xff] }
 0xd0b   :  { %625 = vrot.lane.b32.xlu0 %v621_v55, %s1290_s1  ;;  %v928_v55 = vld [vmem:[%s1546_s4] sm:$0xff]  ;;  %s1021_s4 = sshll.u32 %s1291_s8, 4  ;;  %s1022_s4 = int_to_ptr.vmem [resolvable:$true] %s1021_s4 }
 0xd0c   :  { %s1264_s9 = scalar_lea.vmem %s1022_s4, 128  ;;  %p1269_p1 = scmp.lt.s32.totalorder %s1022_s4, %s1022_s4 }
 0xd0d   :  { %p1265_p0 = scmp.ne.s32.totalorder %s1022_s4, %s1264_s9  ;;  %p1270_p2 = scmp.lt.s32.totalorder %s1264_s9, %s1264_s9 }
 0xd0f   :  { %p1271_p3 = por %p1270_p2, %p1269_p1 }
 0xd11   :  { %p1272_p4 = pnand %p1271_p3, %p1265_p0 }
 0xd15   :  { %v61_v57 = vpop.permute.xlu1 %60 }
 0xd16   :  { %v84_v58 = vmul.f32 %v1386_v7, %v61_v57 }
 0xd7d   :  { %v626_v56 = vpop.permute.xlu0 %625 }
 0xd7e   :  { %1157 = vmatmul.mubr.msk.f32.vlgmr.msra.gmra.mxu1 %vm115_vm1, %v626_v56 }
 0xd7f   :  { %1171 = vmatpush3.msra.mxu1 %v1330_v0  ;;  %1178 = vmatprep.mubr.msk.f32.mxu1 %vm1287_vm0, %v1286_v1  ;;  %v99_v0 = vadd.f32 %v1392_v10, %v84_v58 }
 0xd80   :  { %1172 = vmatprep.subr.mxu1 %v1286_v1 }
 0xd81   :  { %1173 = vmatpush3.msra.mxu1 %v1336_v2 }
 0xd82   :  { %1174 = vmatprep.subr.mxu1 %v1286_v1 }
 0xd83   :  { %1175 = vmatpush3.msra.mxu1 %v1348_v5 }
 0xd84   :  { %1176 = vmatprep.subr.mxu1 %v1286_v1 }
 0xd85   :  { %1177 = vmatpush3.msra.mxu1 %v1356_v6 }
 0xe3e   :  { %v695_v59 = vpop.f32.mrf.mxu1 }
 0xe3f   :  { %v699_v60 = vadd.f32 %v695_v59, %v99_v0  ;;  %v1046_v59 = vld [vmem:[%s1547_s5] ss:$0 sm:$0xff] }
 0xe40   :  { %v1158_v61 = vpop.f32.mrf.mxu1 }
 0xe41   :  { %1240 = vtanh.f32 %v699_v60  ;;  %v1041_v2 = vmul.f32 -1.442695, %v699_v60 }
 0xe43   :  { %1242 = vpow2.f32 %v1041_v2 }
 0xe4e   :  { %v1241_v62 = vpop.eup %1240 }
 0xe4f   :  { %709 = vrot.lane.b32.xlu0 %v1241_v62, %s1289_s10 }
 0xe50   :  { %v1243_v63 = vpop.eup %1242 }
 0xe51   :  { %v703_v5 = vadd.f32 1.0, %v1243_v63 }
 0xe53   :  { %1244 = vrcp.f32 %v703_v5 }
 0xe60   :  { %v1245_v3 = vpop.eup %1244 }
 0xe61   :  { %v707_v8 = vmul.f32 %v1245_v3, %v615_v51 }
 0xec1   :  { %v710_v4 = vpop.permute.xlu0 %709 }
 0xec2   :  { %v712_v6 = vmul.f32 %v1245_v3, %v710_v4 }
 0xec4   :  { %714 = vrot.lane.b32.xlu1 %v712_v6, %s1290_s1 }
 0xf36   :  { %v715_v9 = vpop.permute.xlu1 %714 }
 0xf37   :  { %v717_v11 = vadd.f32 %v715_v9, %v707_v8 }
 0xf39   :  { %1246 = vtanh.f32 %v717_v11 }
 0xf46   :  { %v1247_v12 = vpop.eup %1246 }
 0xf47   :  { %720 = vrot.lane.b32.xlu0 %v1247_v12, %s1289_s10 }
 0xf4b   :  { %65 = vperm.xlu0 %1198, %v30_v13  }
 0xfb9   :  { %v721_v14 = vpop.permute.xlu0 %720 }
 0xfba   :  { %v723_v15 = vmul.f32 %v1245_v3, %v721_v14 }
 0xfbc   :  { %727 = vrot.lane.b32.xlu1 %v723_v15, %s1290_s1 }
 0xfc6   :  { %v66_v17 = vpop.permute.xlu0 %65 }
 0xfc7   :  { %v85_v18 = vmul.f32 %v1386_v7, %v66_v17 }
 0xfc9   :  { %v100_v19 = vadd.f32 %v1392_v10, %v85_v18 }
0x102e   :  { %v728_v16 = vpop.permute.xlu1 %727 }
0x102f   :  { %1168 = vmatmul.mubr.msk.f32.vlgmr.msra.gmra.mxu0 %vm115_vm1, %v728_v16 }
0x1030   :  { %1189 = vmatprep.mubr.msk.f32.mxu0 %vm1287_vm0, %v1286_v1  ;;  %1182 = vmatpush3.msra.mxu0 %v931_v52 }
0x1031   :  { %1183 = vmatprep.subr.mxu0 %v1286_v1 }
0x1032   :  { %1184 = vmatpush3.msra.mxu0 %v930_v53 }
0x1033   :  { %1185 = vmatprep.subr.mxu0 %v1286_v1 }
0x1034   :  { %1186 = vmatpush3.msra.mxu0 %v929_v54 }
0x1035   :  { %1187 = vmatprep.subr.mxu0 %v1286_v1 }
0x1036   :  { %1188 = vmatpush3.msra.mxu0 %v928_v55 }
0x10ef   :  { %v797_v20 = vpop.f32.mrf.mxu0 }
0x10f0   :  { %v801_v21 = vadd.f32 %v797_v20, %v100_v19 }
0x10f1   :  { %v1169_v22 = vpop.f32.mrf.mxu0 }
0x10f2   :  { %1248 = vtanh.f32 %v801_v21  ;;  %v1043_v24 = vmul.f32 -1.442695, %v801_v21 }
0x10f4   :  { %1250 = vpow2.f32 %v1043_v24 }
0x10ff   :  { %v1249_v23 = vpop.eup %1248 }
0x1100   :  { %811 = vrot.lane.b32.xlu1 %v1249_v23, %s1289_s10 }
0x1101   :  { %v1251_v25 = vpop.eup %1250 }
0x1102   :  { %v805_v26 = vadd.f32 1.0, %v1251_v25 }
0x1104   :  { %1252 = vrcp.f32 %v805_v26 }
0x1111   :  { %v1253_v27 = vpop.eup %1252 }
0x1112   :  { %v809_v30 = vmul.f32 %v1253_v27, %v717_v11 }
0x1172   :  { %v812_v28 = vpop.permute.xlu1 %811 }
0x1173   :  { %v814_v29 = vmul.f32 %v1253_v27, %v812_v28 }
0x1175   :  { %816 = vrot.lane.b32.xlu0 %v814_v29, %s1290_s1 }
0x11e7   :  { %v817_v31 = vpop.permute.xlu0 %816 }
0x11e8   :  { %v819_v32 = vadd.f32 %v817_v31, %v809_v30 }
0x11ea   :  { %1254 = vtanh.f32 %v819_v32 }
0x11f7   :  { %v1255_v33 = vpop.eup %1254 }
0x11f8   :  { %822 = vrot.lane.b32.xlu1 %v1255_v33, %s1289_s10 }
0x11fc   :  { %70 = vperm.xlu1 %1199, %v31_v34  }
0x126a   :  { %v823_v35 = vpop.permute.xlu1 %822 }
0x126b   :  { %v825_v36 = vmul.f32 %v1253_v27, %v823_v35 }
0x126d   :  { %829 = vrot.lane.b32.xlu0 %v825_v36, %s1290_s1 }
0x1277   :  { %v71_v38 = vpop.permute.xlu1 %70 }
0x1278   :  { %v86_v39 = vmul.f32 %v1386_v7, %v71_v38 }
0x127a   :  { %v101_v40 = vadd.f32 %v1392_v10, %v86_v39 }
0x12df   :  { %v830_v37 = vpop.permute.xlu0 %829 }
0x12e0   :  { %1179 = vmatmul.mubr.msk.f32.vlgmr.msra.gmra.mxu1 %vm115_vm1, %v830_v37 }
0x13a0   :  { %v899_v41 = vpop.f32.mrf.mxu1 }
0x13a1   :  { %v903_v42 = vadd.f32 %v899_v41, %v101_v40 }
0x13a2   :  { %v1180_v43 = vpop.f32.mrf.mxu1 }
0x13a3   :  { %1256 = vtanh.f32 %v903_v42  ;;  %v1045_v45 = vmul.f32 -1.442695, %v903_v42 }
0x13a5   :  { %1258 = vpow2.f32 %v1045_v45 }
0x13b0   :  { %v1257_v44 = vpop.eup %1256 }
0x13b1   :  { %913 = vrot.lane.b32.xlu0 %v1257_v44, %s1289_s10 }
0x13b2   :  { %v1259_v46 = vpop.eup %1258 }
0x13b3   :  { %v907_v47 = vadd.f32 1.0, %v1259_v46 }
0x13b5   :  { %1260 = vrcp.f32 %v907_v47 }
0x13c2   :  { %v1261_v48 = vpop.eup %1260 }
0x13c3   :  { %v911_v7 = vmul.f32 %v1261_v48, %v819_v32 }
0x1423   :  { %v914_v49 = vpop.permute.xlu0 %913 }
0x1424   :  { %v916_v50 = vmul.f32 %v1261_v48, %v914_v49 }
0x1426   :  { %918 = vrot.lane.b32.xlu1 %v916_v50, %s1290_s1 }
0x1498   :  { %v919_v51 = vpop.permute.xlu1 %918 }
0x1499   :  { %v921_v10 = vadd.f32 %v919_v51, %v911_v7 }
0x149b   :  { %1262 = vtanh.f32 %v921_v10 }
0x14a8   :  { %v1263_v56 = vpop.eup %1262 }
0x14a9   :  { %924 = vrot.lane.b32.xlu0 %v1263_v56, %s1289_s10 }
0x151b   :  { %v925_v57 = vpop.permute.xlu0 %924 }
0x151c   :  { %v927_v58 = vmul.f32 %v1261_v48, %v925_v57 }
0x151e   :  { %940 = vrot.lane.b32.xlu1 %v927_v58, %s1290_s1 }
0x1590   :  { %v941_v0 = vpop.permute.xlu1 %940 }
0x1591   :  { %1190 = vmatmul.mubr.msk.f32.vlgmr.msra.gmra.mxu0 %vm115_vm1, %v941_v0 }
0x1651   :  { %v1010_v60 = vpop.f32.mrf.mxu0 }
0x1652   :  { %v1011_v61 = vadd.f32 %v1046_v59, %v1010_v60 }
0x1653   :  { %v1191_v1 = vpop.f32.mrf.mxu0 }
0x1654   :  { %1014 = vst [vmem:[#allocation3] sm:$0xff] %v1011_v61 }
0x1655   :  { %1275 = shalt.err (!%p1272_p4)
}
0x1656   :  { %1024 = dma.vmem_to_hbm [thread:$0]  %s1022_s4, 128, %s1548_s6, [#allocation4]  }
0x1657   :  { %1284 = dma.done.wait [#allocation4], 128  }
0x1658   :  { %1285 = vsyncadd [#allocation4], 4294967168 }
0x1659   :  { %1028 = vsyncpa [#allocation4], 1 }

</bundles_post_ra>
